<compile_context>
chip_gen: v5e
topology: v5e:2x2
jax: 0.10.0
libtpu: 0.0.40
codegen_flags: <defaults>
</compile_context>

<pallas_src>
import functools

import jax
import jax.numpy as jnp
from jax import lax
from jax.experimental import pallas as pl
from jax.experimental.pallas import tpu as pltpu


def _round_up(x, m):
    return ((x + m - 1) // m) * m


def distdqn_kernel(x_ref, w1_ref, b1_ref, w2_ref, b2_ref, wq_ref,
                   logits_ref, qval_ref, *, act_size, natoms):
    # Linear(obs, 512) -> ReLU -> Linear(512, act*atoms), f32 accumulation.
    cdt = w1_ref.dtype
    x = x_ref[...].astype(cdt)                         # x.float() / bf16 path
    h = jnp.dot(x, w1_ref[...], preferred_element_type=jnp.float32)
    h = h + b1_ref[...].astype(jnp.float32)
    h = jnp.maximum(h, 0.0)                            # ReLU
    out = jnp.dot(h.astype(w2_ref.dtype), w2_ref[...],
                  preferred_element_type=jnp.float32)
    out = out + b2_ref[...].astype(jnp.float32)        # (TILE_B, OUT_PAD); padded cols are 0

    logits_ref[...] = out.astype(logits_ref.dtype)     # lane-dense 128-wide store

    # Fused epilogue: per-action softmax over the NATOMS columns + q = sum(p*support).
    col = lax.broadcasted_iota(jnp.int32, out.shape, 1)
    valid = col < act_size * natoms

    # Per-action (group-of-natoms) max for softmax stability. act_size is tiny
    # and static, so this is a short unrolled loop of XLU lane-reductions.
    gmax = jnp.zeros_like(out)
    for a in range(act_size):
        mask_a = (col >= a * natoms) & (col < (a + 1) * natoms)
        ga = jnp.max(jnp.where(mask_a, out, -1e30), axis=-1, keepdims=True)
        gmax = jnp.where(mask_a, ga, gmax)

    e = jnp.where(valid, jnp.exp(out - gmax), 0.0)     # EUP exp, padded cols -> 0

    gsum = jnp.ones_like(out)                          # ones on padded cols avoids 0/0
    for a in range(act_size):
        mask_a = (col >= a * natoms) & (col < (a + 1) * natoms)
        sa = jnp.sum(jnp.where(mask_a, e, 0.0), axis=-1, keepdims=True)
        gsum = jnp.where(mask_a, sa, gsum)

    probs = e / gsum                                   # (TILE_B, OUT_PAD)

    # wq[c, a] = support[c % natoms] if column c belongs to action a else 0,
    # so one lane-dense MXU matmul yields q-values padded to 128 lanes.
    q = jnp.dot(probs, wq_ref[...], preferred_element_type=jnp.float32)
    qval_ref[...] = q.astype(qval_ref.dtype)


def _qval_weight_matrix(act_size, natoms, vmin, vmax, out_pad, act_pad):
    support = jnp.linspace(vmin, vmax, natoms).astype(jnp.float32)
    c = jnp.arange(out_pad)
    a = jnp.arange(act_pad)
    in_action = (c[:, None] // natoms == a[None, :]) & (c[:, None] < act_size * natoms)
    return jnp.where(in_action, support[c % natoms][:, None], 0.0).astype(jnp.float32)


def distdqn_both(x, w1, b1, w2, b2, act_size, natoms, vmin, vmax, *, tile_b=128):
    """Fused DistDQN forward + qval.

    Returns (logits [B, act, natoms], qvals [B, act]):
      forward() -> logits, qval() -> qvals, both() -> the pair.
    """
    B, obs = x.shape
    hidden = w1.shape[-1]
    out_dim = act_size * natoms
    assert w2.shape == (hidden, out_dim)

    out_pad = _round_up(out_dim, 128)
    act_pad = _round_up(act_size, 128)
    tile_b = min(tile_b, _round_up(B, 8))
    b_pad = _round_up(B, tile_b)

    x_p = jnp.pad(x, ((0, b_pad - B), (0, 0))) if b_pad != B else x
    b1_2d = b1.reshape(1, hidden)
    # Lane-dense N: zero-pad the output columns up to a multiple of 128. (Done
    # per call here for simplicity; in deployment pad the weights once at load.)
    w2_p = jnp.pad(w2, ((0, 0), (0, out_pad - out_dim)))
    b2_p = jnp.pad(b2.reshape(1, out_dim), ((0, 0), (0, out_pad - out_dim)))
    wq = _qval_weight_matrix(act_size, natoms, vmin, vmax, out_pad, act_pad)

    # TODO(synk): for realistic flattened observations (e.g. 84*84*4) the
    # whole-array w1 BlockSpec exceeds the VMEM budget (esp. v7x 64 MiB);
    # tile the K (obs) axis with an f32 VMEM accumulator + "arbitrary" axis.

    kernel = functools.partial(distdqn_kernel, act_size=act_size, natoms=natoms)
    grid = (b_pad // tile_b,)
    logits_p, q_p = pl.pallas_call(
        kernel,
        out_shape=(
            jax.ShapeDtypeStruct((b_pad, out_pad), jnp.float32),
            jax.ShapeDtypeStruct((b_pad, act_pad), jnp.float32),
        ),
        grid=grid,
        in_specs=[
            pl.BlockSpec((tile_b, obs), lambda i: (i, 0)),     # x: tiled over batch
            pl.BlockSpec((obs, hidden), lambda i: (0, 0)),     # weights stay resident
            pl.BlockSpec((1, hidden), lambda i: (0, 0)),
            pl.BlockSpec((hidden, out_pad), lambda i: (0, 0)),
            pl.BlockSpec((1, out_pad), lambda i: (0, 0)),
            pl.BlockSpec((out_pad, act_pad), lambda i: (0, 0)),
        ],
        out_specs=(
            pl.BlockSpec((tile_b, out_pad), lambda i: (i, 0)),
            pl.BlockSpec((tile_b, act_pad), lambda i: (i, 0)),
        ),
        compiler_params=pltpu.CompilerParams(
            # Batch tiles are independent -> megacore-parallel on v7x.
            dimension_semantics=("parallel",),
        ),
    )(x_p, w1, b1_2d, w2_p, b2_p, wq)

    logits = logits_p[:B, :out_dim].reshape(B, act_size, natoms)
    qvals = q_p[:B, :act_size]
    return logits, qvals


def distdqn_forward(x, w1, b1, w2, b2, act_size, natoms, vmin=-10.0, vmax=10.0):
    """DistDQN.forward equivalent: (B, act_size, NATOMS) logits."""
    return distdqn_both(x, w1, b1, w2, b2, act_size, natoms, vmin, vmax)[0]


def init_params(key, obs_size, hidden, act_size, natoms):
    """Deterministic synthetic init (PyTorch-Linear-style uniform bounds)."""
    k1, k2, k3, k4 = jax.random.split(key, 4)
    bound1 = 1.0 / jnp.sqrt(obs_size)
    bound2 = 1.0 / jnp.sqrt(hidden)
    w1 = jax.random.uniform(k1, (obs_size, hidden), jnp.float32, -bound1, bound1)
    b1 = jax.random.uniform(k2, (1, hidden), jnp.float32, -bound1, bound1)
    w2 = jax.random.uniform(k3, (hidden, act_size * natoms), jnp.float32, -bound2, bound2)
    b2 = jax.random.uniform(k4, (1, act_size * natoms), jnp.float32, -bound2, bound2)
    return w1, b1, w2, b2


if __name__ == "__main__":
    B, OBS, HIDDEN, ACT, NATOMS = 2, 16, 512, 3, 8
    VMIN, VMAX = -10.0, 10.0

    key = jax.random.PRNGKey(0)
    kx, kp = jax.random.split(key)
    x = jax.random.normal(kx, (B, OBS), jnp.float32)
    w1, b1, w2, b2 = init_params(kp, OBS, HIDDEN, ACT, NATOMS)

    # f32 weights: strict correctness check of forward() and qval().
    logits, qvals = distdqn_both(x, w1, b1, w2, b2, ACT, NATOMS, VMIN, VMAX)
    logits, qvals = jax.block_until_ready((logits, qvals))
    assert logits.shape == (B, ACT, NATOMS), logits.shape
    assert qvals.shape == (B, ACT), qvals.shape

    # Pure-JAX reference: forward(), apply_softmax(), both()/qval().
    ref_logits = (jnp.maximum(x @ w1 + b1, 0.0) @ w2 + b2).reshape(B, ACT, NATOMS)
    support = jnp.linspace(VMIN, VMAX, NATOMS)
    ref_probs = jax.nn.softmax(ref_logits.reshape(-1, NATOMS), axis=1).reshape(B, ACT, NATOMS)
    ref_q = (ref_probs * support).sum(axis=2)
    assert jnp.allclose(logits, ref_logits, atol=1e-4, rtol=1e-4)
    assert jnp.allclose(qvals, ref_q, atol=1e-4, rtol=1e-4)

    # bf16 weight path (halves weight DMA; f32 MXU accumulation). Loose check.
    logits_bf, q_bf = distdqn_both(x, w1.astype(jnp.bfloat16), b1,
                                   w2.astype(jnp.bfloat16), b2,
                                   ACT, NATOMS, VMIN, VMAX)
    logits_bf, q_bf = jax.block_until_ready((logits_bf, q_bf))
    assert jnp.allclose(logits_bf, ref_logits, atol=5e-2, rtol=5e-2)
    assert jnp.allclose(q_bf, ref_q, atol=0.5)

    print("KERNEL_OK")
</pallas_src>

<mosaic_0001>
module attributes {stable_mosaic.version = 11 : i64} {
  func.func @distdqn_kernel(%arg0: i32, %arg1: memref<8x16xf32, #tpu.memory_space<vmem>>, %arg2: memref<16x512xf32, #tpu.memory_space<vmem>>, %arg3: memref<1x512xf32, #tpu.memory_space<vmem>>, %arg4: memref<512x128xf32, #tpu.memory_space<vmem>>, %arg5: memref<1x128xf32, #tpu.memory_space<vmem>>, %arg6: memref<128x128xf32, #tpu.memory_space<vmem>>, %arg7: memref<8x128xf32, #tpu.memory_space<vmem>>, %arg8: memref<8x128xf32, #tpu.memory_space<vmem>>) attributes {dimension_semantics = [#tpu.dimension_semantics<parallel>], iteration_bounds = array<i64: 1>, scalar_prefetch = 0 : i64, scratch_operands = 0 : i64, tpu.core_type = #tpu.core_type<tc>, window_params = [{transform_indices = @transform_0, window_bounds = array<i64: 8, 16>}, {pipeline_mode = #tpu.pipeline_mode<synchronous>, transform_indices = @transform_1, window_bounds = array<i64: 16, 512>}, {pipeline_mode = #tpu.pipeline_mode<synchronous>, transform_indices = @transform_2, window_bounds = array<i64: 1, 512>}, {pipeline_mode = #tpu.pipeline_mode<synchronous>, transform_indices = @transform_3, window_bounds = array<i64: 512, 128>}, {pipeline_mode = #tpu.pipeline_mode<synchronous>, transform_indices = @transform_4, window_bounds = array<i64: 1, 128>}, {pipeline_mode = #tpu.pipeline_mode<synchronous>, transform_indices = @transform_5, window_bounds = array<i64: 128, 128>}, {transform_indices = @transform_6, window_bounds = array<i64: 8, 128>}, {transform_indices = @transform_7, window_bounds = array<i64: 8, 128>}]} {
    %c0 = arith.constant 0 : index
    %c0_0 = arith.constant 0 : index
    %0 = vector.load %arg1[%c0, %c0_0] : memref<8x16xf32, #tpu.memory_space<vmem>>, vector<8x16xf32>
    %c0_1 = arith.constant 0 : index
    %c0_2 = arith.constant 0 : index
    %1 = vector.load %arg2[%c0_1, %c0_2] : memref<16x512xf32, #tpu.memory_space<vmem>>, vector<16x512xf32>
    %cst = arith.constant dense<0.000000e+00> : vector<8x512xf32>
    %2 = tpu.matmul %0, %1, %cst {dimension_numbers = #tpu.dot_dimension_numbers<[1], [0], [0], [1], [0, 0, 1, 1], [], []>} : vector<8x16xf32>, vector<16x512xf32>, vector<8x512xf32> -> vector<8x512xf32>
    %c0_3 = arith.constant 0 : index
    %c0_4 = arith.constant 0 : index
    %3 = vector.load %arg3[%c0_3, %c0_4] : memref<1x512xf32, #tpu.memory_space<vmem>>, vector<1x512xf32>
    %4 = vector.broadcast %3 : vector<1x512xf32> to vector<8x512xf32>
    %5 = arith.addf %2, %4 : vector<8x512xf32>
    %cst_5 = arith.constant 0.000000e+00 : f32
    %6 = vector.broadcast %cst_5 : f32 to vector<8x512xf32>
    %7 = arith.maximumf %5, %6 : vector<8x512xf32>
    %c0_6 = arith.constant 0 : index
    %c0_7 = arith.constant 0 : index
    %8 = vector.load %arg4[%c0_6, %c0_7] : memref<512x128xf32, #tpu.memory_space<vmem>>, vector<512x128xf32>
    %cst_8 = arith.constant dense<0.000000e+00> : vector<8x128xf32>
    %9 = tpu.matmul %7, %8, %cst_8 {dimension_numbers = #tpu.dot_dimension_numbers<[1], [0], [0], [1], [0, 0, 1, 1], [], []>} : vector<8x512xf32>, vector<512x128xf32>, vector<8x128xf32> -> vector<8x128xf32>
    %c0_9 = arith.constant 0 : index
    %c0_10 = arith.constant 0 : index
    %10 = vector.load %arg5[%c0_9, %c0_10] : memref<1x128xf32, #tpu.memory_space<vmem>>, vector<1x128xf32>
    %11 = vector.broadcast %10 : vector<1x128xf32> to vector<8x128xf32>
    %12 = arith.addf %9, %11 : vector<8x128xf32>
    %c0_11 = arith.constant 0 : index
    %c0_12 = arith.constant 0 : index
    %13 = vector.load %arg7[%c0_11, %c0_12] : memref<8x128xf32, #tpu.memory_space<vmem>>, vector<8x128xf32>
    tpu.vector_store %arg7[%c0_11, %c0_12], %12 {strides = array<i32>} : memref<8x128xf32, #tpu.memory_space<vmem>>, vector<8x128xf32>,
    %14 = tpu.iota {dimensions = array<i32: 1>} : vector<8x128xi32>
    %c24_i32 = arith.constant 24 : i32
    %15 = vector.broadcast %c24_i32 : i32 to vector<8x128xi32>
    %16 = arith.cmpi slt, %14, %15 : vector<8x128xi32>
    %cst_13 = arith.constant 0.000000e+00 : f32
    %17 = vector.broadcast %cst_13 : f32 to vector<8x128xf32>
    %c0_i32 = arith.constant 0 : i32
    %18 = vector.broadcast %c0_i32 : i32 to vector<8x128xi32>
    %19 = arith.cmpi sge, %14, %18 : vector<8x128xi32>
    %c8_i32 = arith.constant 8 : i32
    %20 = vector.broadcast %c8_i32 : i32 to vector<8x128xi32>
    %21 = arith.cmpi slt, %14, %20 : vector<8x128xi32>
    %22 = arith.andi %19, %21 : vector<8x128xi1>
    %cst_14 = arith.constant -1.000000e+30 : f32
    %23 = vector.broadcast %cst_14 : f32 to vector<8x128xf32>
    %24 = arith.select %22, %12, %23 : vector<8x128xi1>, vector<8x128xf32>
    %cst_15 = arith.constant dense<0xFF800000> : vector<8xf32>
    %25 = vector.multi_reduction <maximumf>, %24, %cst_15 [1] : vector<8x128xf32> to vector<8xf32>
    %26 = vector.shape_cast %25 : vector<8xf32> to vector<8x1xf32>
    %27 = vector.shape_cast %26 : vector<8x1xf32> to vector<8x1xf32>
    %28 = vector.broadcast %27 : vector<8x1xf32> to vector<8x128xf32>
    %29 = arith.select %22, %28, %17 : vector<8x128xi1>, vector<8x128xf32>
    %c8_i32_16 = arith.constant 8 : i32
    %30 = vector.broadcast %c8_i32_16 : i32 to vector<8x128xi32>
    %31 = arith.cmpi sge, %14, %30 : vector<8x128xi32>
    %c16_i32 = arith.constant 16 : i32
    %32 = vector.broadcast %c16_i32 : i32 to vector<8x128xi32>
    %33 = arith.cmpi slt, %14, %32 : vector<8x128xi32>
    %34 = arith.andi %31, %33 : vector<8x128xi1>
    %cst_17 = arith.constant -1.000000e+30 : f32
    %35 = vector.broadcast %cst_17 : f32 to vector<8x128xf32>
    %36 = arith.select %34, %12, %35 : vector<8x128xi1>, vector<8x128xf32>
    %cst_18 = arith.constant dense<0xFF800000> : vector<8xf32>
    %37 = vector.multi_reduction <maximumf>, %36, %cst_18 [1] : vector<8x128xf32> to vector<8xf32>
    %38 = vector.shape_cast %37 : vector<8xf32> to vector<8x1xf32>
    %39 = vector.shape_cast %38 : vector<8x1xf32> to vector<8x1xf32>
    %40 = vector.broadcast %39 : vector<8x1xf32> to vector<8x128xf32>
    %41 = arith.select %34, %40, %29 : vector<8x128xi1>, vector<8x128xf32>
    %c16_i32_19 = arith.constant 16 : i32
    %42 = vector.broadcast %c16_i32_19 : i32 to vector<8x128xi32>
    %43 = arith.cmpi sge, %14, %42 : vector<8x128xi32>
    %c24_i32_20 = arith.constant 24 : i32
    %44 = vector.broadcast %c24_i32_20 : i32 to vector<8x128xi32>
    %45 = arith.cmpi slt, %14, %44 : vector<8x128xi32>
    %46 = arith.andi %43, %45 : vector<8x128xi1>
    %cst_21 = arith.constant -1.000000e+30 : f32
    %47 = vector.broadcast %cst_21 : f32 to vector<8x128xf32>
    %48 = arith.select %46, %12, %47 : vector<8x128xi1>, vector<8x128xf32>
    %cst_22 = arith.constant dense<0xFF800000> : vector<8xf32>
    %49 = vector.multi_reduction <maximumf>, %48, %cst_22 [1] : vector<8x128xf32> to vector<8xf32>
    %50 = vector.shape_cast %49 : vector<8xf32> to vector<8x1xf32>
    %51 = vector.shape_cast %50 : vector<8x1xf32> to vector<8x1xf32>
    %52 = vector.broadcast %51 : vector<8x1xf32> to vector<8x128xf32>
    %53 = arith.select %46, %52, %41 : vector<8x128xi1>, vector<8x128xf32>
    %54 = arith.subf %12, %53 : vector<8x128xf32>
    %55 = math.exp %54 : vector<8x128xf32>
    %cst_23 = arith.constant 0.000000e+00 : f32
    %56 = vector.broadcast %cst_23 : f32 to vector<8x128xf32>
    %57 = arith.select %16, %55, %56 : vector<8x128xi1>, vector<8x128xf32>
    %cst_24 = arith.constant 1.000000e+00 : f32
    %58 = vector.broadcast %cst_24 : f32 to vector<8x128xf32>
    %c0_i32_25 = arith.constant 0 : i32
    %59 = vector.broadcast %c0_i32_25 : i32 to vector<8x128xi32>
    %60 = arith.cmpi sge, %14, %59 : vector<8x128xi32>
    %c8_i32_26 = arith.constant 8 : i32
    %61 = vector.broadcast %c8_i32_26 : i32 to vector<8x128xi32>
    %62 = arith.cmpi slt, %14, %61 : vector<8x128xi32>
    %63 = arith.andi %60, %62 : vector<8x128xi1>
    %cst_27 = arith.constant 0.000000e+00 : f32
    %64 = vector.broadcast %cst_27 : f32 to vector<8x128xf32>
    %65 = arith.select %63, %57, %64 : vector<8x128xi1>, vector<8x128xf32>
    %cst_28 = arith.constant dense<0.000000e+00> : vector<8xf32>
    %66 = vector.multi_reduction <add>, %65, %cst_28 [1] : vector<8x128xf32> to vector<8xf32>
    %67 = vector.shape_cast %66 : vector<8xf32> to vector<8x1xf32>
    %68 = vector.shape_cast %67 : vector<8x1xf32> to vector<8x1xf32>
    %69 = vector.broadcast %68 : vector<8x1xf32> to vector<8x128xf32>
    %70 = arith.select %63, %69, %58 : vector<8x128xi1>, vector<8x128xf32>
    %c8_i32_29 = arith.constant 8 : i32
    %71 = vector.broadcast %c8_i32_29 : i32 to vector<8x128xi32>
    %72 = arith.cmpi sge, %14, %71 : vector<8x128xi32>
    %c16_i32_30 = arith.constant 16 : i32
    %73 = vector.broadcast %c16_i32_30 : i32 to vector<8x128xi32>
    %74 = arith.cmpi slt, %14, %73 : vector<8x128xi32>
    %75 = arith.andi %72, %74 : vector<8x128xi1>
    %cst_31 = arith.constant 0.000000e+00 : f32
    %76 = vector.broadcast %cst_31 : f32 to vector<8x128xf32>
    %77 = arith.select %75, %57, %76 : vector<8x128xi1>, vector<8x128xf32>
    %cst_32 = arith.constant dense<0.000000e+00> : vector<8xf32>
    %78 = vector.multi_reduction <add>, %77, %cst_32 [1] : vector<8x128xf32> to vector<8xf32>
    %79 = vector.shape_cast %78 : vector<8xf32> to vector<8x1xf32>
    %80 = vector.shape_cast %79 : vector<8x1xf32> to vector<8x1xf32>
    %81 = vector.broadcast %80 : vector<8x1xf32> to vector<8x128xf32>
    %82 = arith.select %75, %81, %70 : vector<8x128xi1>, vector<8x128xf32>
    %c16_i32_33 = arith.constant 16 : i32
    %83 = vector.broadcast %c16_i32_33 : i32 to vector<8x128xi32>
    %84 = arith.cmpi sge, %14, %83 : vector<8x128xi32>
    %c24_i32_34 = arith.constant 24 : i32
    %85 = vector.broadcast %c24_i32_34 : i32 to vector<8x128xi32>
    %86 = arith.cmpi slt, %14, %85 : vector<8x128xi32>
    %87 = arith.andi %84, %86 : vector<8x128xi1>
    %cst_35 = arith.constant 0.000000e+00 : f32
    %88 = vector.broadcast %cst_35 : f32 to vector<8x128xf32>
    %89 = arith.select %87, %57, %88 : vector<8x128xi1>, vector<8x128xf32>
    %cst_36 = arith.constant dense<0.000000e+00> : vector<8xf32>
    %90 = vector.multi_reduction <add>, %89, %cst_36 [1] : vector<8x128xf32> to vector<8xf32>
    %91 = vector.shape_cast %90 : vector<8xf32> to vector<8x1xf32>
    %92 = vector.shape_cast %91 : vector<8x1xf32> to vector<8x1xf32>
    %93 = vector.broadcast %92 : vector<8x1xf32> to vector<8x128xf32>
    %94 = arith.select %87, %93, %82 : vector<8x128xi1>, vector<8x128xf32>
    %95 = arith.divf %57, %94 : vector<8x128xf32>
    %c0_37 = arith.constant 0 : index
    %c0_38 = arith.constant 0 : index
    %96 = vector.load %arg6[%c0_37, %c0_38] : memref<128x128xf32, #tpu.memory_space<vmem>>, vector<128x128xf32>
    %cst_39 = arith.constant dense<0.000000e+00> : vector<8x128xf32>
    %97 = tpu.matmul %95, %96, %cst_39 {dimension_numbers = #tpu.dot_dimension_numbers<[1], [0], [0], [1], [0, 0, 1, 1], [], []>} : vector<8x128xf32>, vector<128x128xf32>, vector<8x128xf32> -> vector<8x128xf32>
    %c0_40 = arith.constant 0 : index
    %c0_41 = arith.constant 0 : index
    %98 = vector.load %arg8[%c0_40, %c0_41] : memref<8x128xf32, #tpu.memory_space<vmem>>, vector<8x128xf32>
    tpu.vector_store %arg8[%c0_40, %c0_41], %97 {strides = array<i32>} : memref<8x128xf32, #tpu.memory_space<vmem>>, vector<8x128xf32>,
    return
  }
  func.func @transform_0(%arg0: i32) -> (i32, i32) {
    %c0_i32 = arith.constant 0 : i32
    %c0_i32_0 = arith.constant 0 : i32
    return %arg0, %c0_i32 : i32, i32
  }
  func.func @transform_1(%arg0: i32) -> (i32, i32) {
    %c0_i32 = arith.constant 0 : i32
    %c0_i32_0 = arith.constant 0 : i32
    %c0_i32_1 = arith.constant 0 : i32
    return %c0_i32, %c0_i32_0 : i32, i32
  }
  func.func @transform_2(%arg0: i32) -> (i32, i32) {
    %c0_i32 = arith.constant 0 : i32
    %c0_i32_0 = arith.constant 0 : i32
    %c0_i32_1 = arith.constant 0 : i32
    return %c0_i32, %c0_i32_0 : i32, i32
  }
  func.func @transform_3(%arg0: i32) -> (i32, i32) {
    %c0_i32 = arith.constant 0 : i32
    %c0_i32_0 = arith.constant 0 : i32
    %c0_i32_1 = arith.constant 0 : i32
    return %c0_i32, %c0_i32_0 : i32, i32
  }
  func.func @transform_4(%arg0: i32) -> (i32, i32) {
    %c0_i32 = arith.constant 0 : i32
    %c0_i32_0 = arith.constant 0 : i32
    %c0_i32_1 = arith.constant 0 : i32
    return %c0_i32, %c0_i32_0 : i32, i32
  }
  func.func @transform_5(%arg0: i32) -> (i32, i32) {
    %c0_i32 = arith.constant 0 : i32
    %c0_i32_0 = arith.constant 0 : i32
    %c0_i32_1 = arith.constant 0 : i32
    return %c0_i32, %c0_i32_0 : i32, i32
  }
  func.func @transform_6(%arg0: i32) -> (i32, i32) {
    %c0_i32 = arith.constant 0 : i32
    %c0_i32_0 = arith.constant 0 : i32
    return %arg0, %c0_i32 : i32, i32
  }
  func.func @transform_7(%arg0: i32) -> (i32, i32) {
    %c0_i32 = arith.constant 0 : i32
    %c0_i32_0 = arith.constant 0 : i32
    return %arg0, %c0_i32 : i32, i32
  }
}

</mosaic_0001>

<bundles_post_ra>
// kernel: tpu_custom_call.1
= control target key start
LH: loop header
LB: loop body
LE: loop exit
PB: predicated region body
PF: predicated region fallthrough
CT: control target
= control target key end

     0   :  { %13 = vsyncpa [#allocation3], 0  ;;  %s803_s0 = inlined_call_operand.hbm [shape: f32[8,16], index: 0, kind: input, shape index: {}]   ;;  %s804_s1 = inlined_call_operand.hbm [shape: f32[16,512], index: 1, kind: input, shape index: {}]   ;;  %s805_s2 = inlined_call_operand.hbm [shape: f32[1,512], index: 2, kind: input, shape index: {}]   ;;  %s806_s3 = inlined_call_operand.hbm [shape: f32[512,128], index: 3, kind: input, shape index: {}]   ;;  %s807_s4 = inlined_call_operand.vmem [shape: f32[1,128], index: 4, kind: input, shape index: {}]   ;;  %s808_s5 = inlined_call_operand.hbm [shape: f32[128,128], index: 5, kind: input, shape index: {}]   ;;  %s809_s6 = inlined_call_operand.hbm [shape: f32[8,128], index: 6, kind: output, shape index: {0}]   ;;  %s810_s7 = inlined_call_operand.hbm [shape: f32[8,128], index: 7, kind: output, shape index: {1}]  }
   0x1   :  { %14 = vsyncpa [#allocation6], 0 }
   0x2   :  { %15 = vsyncpa [#allocation9], 0 }
   0x3   :  { %16 = vsyncpa [#allocation4], 0  ;;  %s33_s26 = sshll.u32 %s804_s1, 4  ;;  %s34_s26 = int_to_ptr.hbm [resolvable:$true] %s33_s26 }
   0x4   :  { %17 = vsyncpa [#allocation13], 0  ;;  %s681_s27 = smov [#allocation5]   ;;  %s57_s8 = sshll.u32 %s806_s3, 4  ;;  %s58_s8 = int_to_ptr.hbm [resolvable:$true] %s57_s8 }
   0x5   :  { %s35_s28 = sshll.u32 %s681_s27, 4  ;;  %s682_s9 = smov 512   ;;  %s36_s28 = int_to_ptr.vmem [resolvable:$true] %s35_s28 }
   0x6   :  { %s683_s10 = smov 32   ;;  %s684_s11 = smov [#allocation8]  }
   0x7   :  { %41 = dma.hbm_to_vmem [thread:$0]  %s34_s26, 1024, %s36_s28, [#allocation6], %s682_s9, %s682_s9, %s683_s10  }
   0x8   :  { %s59_s12 = sshll.u32 %s684_s11, 4  ;;  %s685_s13 = smov 128   ;;  %s60_s12 = int_to_ptr.vmem [resolvable:$true] %s59_s12 }
   0x9   :  { %s686_s14 = smov 8   ;;  %s23_s16 = sshll.u32 %s803_s0, 4  ;;  %s24_s16 = int_to_ptr.hbm [resolvable:$true] %s23_s16 }
   0xa   :  { %65 = dma.hbm_to_vmem [thread:$0]  %s58_s8, 8192, %s60_s12, [#allocation9], %s685_s13, %s685_s13, %s686_s14  }
   0xb   :  { %s687_s17 = smov [#allocation2]   ;;  %s47_s20 = sshll.u32 %s805_s2, 4  ;;  %s48_s20 = int_to_ptr.hbm [resolvable:$true] %s47_s20 }
   0xc   :  { %s25_s18 = sshll.u32 %s687_s17, 4  ;;  %s688_s21 = smov [#allocation7]   ;;  %s26_s18 = int_to_ptr.vmem [resolvable:$true] %s25_s18 }
   0xd   :  { %28 = dma.hbm_to_vmem [thread:$0]  %s24_s16, 128, %s26_s18, [#allocation3]  }
   0xe   :  { %s49_s22 = sshll.u32 %s688_s21, 4  ;;  %s72_s25 = sshll.u32 %s808_s5, 4  ;;  %s50_s22 = int_to_ptr.vmem [resolvable:$true] %s49_s22  ;;  %s73_s25 = int_to_ptr.hbm [resolvable:$true] %s72_s25 }
   0xf   :  { %52 = dma.hbm_to_vmem [thread:$0]  %s48_s20, 64, %s50_s22, [#allocation6]  }
  0x10   :  { %s689_s0 = smov [#allocation10]  }
  0x11   :  { %s74_s26 = sshll.u32 %s689_s0, 4  ;;  %s75_s26 = int_to_ptr.vmem [resolvable:$true] %s74_s26 }
  0x12   :  { %80 = dma.hbm_to_vmem [thread:$0]  %s73_s25, 2048, %s75_s26, [#allocation9], %s685_s13, %s685_s13, %s686_s14  }
  0x13   :  { %671 = dma.done.wait [#allocation3], 128  }
  0x14   :  { %672 = vsyncadd [#allocation3], 4294967168 }
  0x15   :  { %673 = dma.done.wait [#allocation6], 1088  }
  0x16   :  { %674 = vsyncadd [#allocation6], 4294966208 }
  0x17   :  { %675 = dma.done.wait [#allocation9], 10240  }
  0x18   :  { %676 = vsyncadd [#allocation9], 4294957056  ;;  %v106_v0 = vld [vmem:[#allocation5 + $0x20] sm:$0xff]  ;;  %v108_v1 = vld [vmem:[#allocation5 + $0x30] sm:$0xff]  ;;  %vm120_vm0 = vcmask 130048   ;;  %s455_s30 = sshll.u32 %s809_s6, 4  ;;  %s456_s30 = int_to_ptr.hbm [resolvable:$true] %s455_s30 }
  0x19   :  { %v102_v2 = vld [vmem:[#allocation5] sm:$0xff]  ;;  %138 = vmatpush.msra.mxu1 %v106_v0  ;;  %178 = vmatpush.msra.mxu2 %v108_v1  ;;  %v104_v3 = vld [vmem:[#allocation5 + $0x10] sm:$0xff]  ;;  %v109_v4 = vld [vmem:[#allocation5 + $0x38] sm:$0xff]  ;;  %s691_s8 = smov [#allocation12]   ;;  %s466_s12 = sshll.u32 %s810_s7, 4  ;;  %s467_s12 = int_to_ptr.hbm [resolvable:$true] %s466_s12 }
  0x1a   :  { %v101_v5 = vld [vmem:[#allocation2] sm:$0xff]  ;;  %198 = vmatpush.msra.mxu3 %v109_v4  ;;  %v107_v7 = vld [vmem:[#allocation5 + $0x28] sm:$0xff]  ;;  %s464_s9 = sshll.u32 %s691_s8, 4  ;;  %s465_s9 = int_to_ptr.vmem [resolvable:$true] %s464_s9 }
  0x1b   :  { %v105_v6 = vld [vmem:[#allocation5 + $0x18] sm:$0xff]  ;;  %139 = vmatpush.msra.mxu1 %v102_v2  ;;  %179 = vmatpush.msra.mxu2 %v104_v3  ;;  %v103_v9 = vld [vmem:[#allocation5 + $0x8] sm:$0xff] }
  0x1c   :  { %v223_v8 = vld [vmem:[#allocation8 + $0x78] sm:$0xff]  ;;  %483 = vmatmul.msk.f32.vlgmr.msra.gmra.mxu1 %vm120_vm0, %v101_v5  ;;  %485 = vmatmul.msk.f32.vlgmr.msra.gmra.mxu2 %vm120_vm0, %v101_v5  ;;  %v222_v11 = vld [vmem:[#allocation8 + $0x70] sm:$0xff]  ;;  %v221_v15 = vld [vmem:[#allocation8 + $0x68] sm:$0xff] }
  0x1d   :  { %v255_v10 = vld [vmem:[#allocation8 + $0x178] sm:$0xff]  ;;  %199 = vmatpush.msra.mxu3 %v105_v6  ;;  %158 = vmatpush.msrb.mxu1 %v107_v7  ;;  %v254_v13 = vld [vmem:[#allocation8 + $0x170] sm:$0xff]  ;;  %v253_v17 = vld [vmem:[#allocation8 + $0x168] sm:$0xff] }
  0x1e   :  { %v239_v12 = vld [vmem:[#allocation8 + $0xf8] sm:$0xff]  ;;  %486 = vmatmul.msk.f32.vlgmr.msra.gmra.mxu3 %vm120_vm0, %v101_v5  ;;  %276 = vmatpush.msra.mxu0 %v223_v8  ;;  %v238_v16 = vld [vmem:[#allocation8 + $0xf0] sm:$0xff]  ;;  %v220_v19 = vld [vmem:[#allocation8 + $0x60] sm:$0xff] }
  0x1f   :  { %v271_v14 = vld [vmem:[#allocation8 + $0x1f8] sm:$0xff]  ;;  %159 = vmatpush.msrb.mxu1 %v103_v9  ;;  %316 = vmatpush.msrb.mxu2 %v255_v10  ;;  %v270_v18 = vld [vmem:[#allocation8 + $0x1f0] sm:$0xff]  ;;  %v237_v20 = vld [vmem:[#allocation8 + $0xe8] sm:$0xff] }
  0x20   :  { %277 = vmatpush.msra.mxu0 %v222_v11  ;;  %336 = vmatpush.msrb.mxu3 %v271_v14  ;;  %v252_v21 = vld [vmem:[#allocation8 + $0x160] sm:$0xff]  ;;  %v219_v22 = vld [vmem:[#allocation8 + $0x58] sm:$0xff]  ;;  %v269_v23 = vld [vmem:[#allocation8 + $0x1e8] sm:$0xff] }
  0x21   :  { %296 = vmatpush.msra.mxu1 %v239_v12  ;;  %317 = vmatpush.msrb.mxu2 %v254_v13  ;;  %v236_v24 = vld [vmem:[#allocation8 + $0xe0] sm:$0xff]  ;;  %v251_v25 = vld [vmem:[#allocation8 + $0x158] sm:$0xff]  ;;  %v218_v26 = vld [vmem:[#allocation8 + $0x50] sm:$0xff] }
  0x22   :  { %278 = vmatpush.msra.mxu0 %v221_v15  ;;  %337 = vmatpush.msrb.mxu3 %v270_v18  ;;  %v268_v27 = vld [vmem:[#allocation8 + $0x1e0] sm:$0xff]  ;;  %v235_v28 = vld [vmem:[#allocation8 + $0xd8] sm:$0xff]  ;;  %v250_v29 = vld [vmem:[#allocation8 + $0x150] sm:$0xff] }
  0x23   :  { %297 = vmatpush.msra.mxu1 %v238_v16  ;;  %318 = vmatpush.msrb.mxu2 %v253_v17  ;;  %v217_v30 = vld [vmem:[#allocation8 + $0x48] sm:$0xff]  ;;  %v267_v31 = vld [vmem:[#allocation8 + $0x1d8] sm:$0xff]  ;;  %v234_v32 = vld [vmem:[#allocation8 + $0xd0] sm:$0xff] }
  0x24   :  { %484 = vmatmul.msk.f32.vlgmr.msrb.gmra.mxu1 %vm120_vm0, %v101_v5  ;;  %279 = vmatpush.msra.mxu0 %v220_v19  ;;  %v249_v33 = vld [vmem:[#allocation8 + $0x148] sm:$0xff]  ;;  %v216_v34 = vld [vmem:[#allocation8 + $0x40] sm:$0xff]  ;;  %v266_v35 = vld [vmem:[#allocation8 + $0x1d0] sm:$0xff] }
  0x25   :  { %298 = vmatpush.msra.mxu1 %v237_v20  ;;  %319 = vmatpush.msrb.mxu2 %v252_v21  ;;  %v233_v36 = vld [vmem:[#allocation8 + $0xc8] sm:$0xff]  ;;  %v248_v37 = vld [vmem:[#allocation8 + $0x140] sm:$0xff]  ;;  %v215_v38 = vld [vmem:[#allocation8 + $0x38] sm:$0xff] }
  0x26   :  { %280 = vmatpush.msra.mxu0 %v219_v22  ;;  %338 = vmatpush.msrb.mxu3 %v269_v23  ;;  %v265_v39 = vld [vmem:[#allocation8 + $0x1c8] sm:$0xff]  ;;  %v232_v40 = vld [vmem:[#allocation8 + $0xc0] sm:$0xff]  ;;  %v247_v41 = vld [vmem:[#allocation8 + $0x138] sm:$0xff] }
  0x27   :  { %299 = vmatpush.msra.mxu1 %v236_v24  ;;  %320 = vmatpush.msrb.mxu2 %v251_v25  ;;  %v214_v42 = vld [vmem:[#allocation8 + $0x30] sm:$0xff]  ;;  %v264_v43 = vld [vmem:[#allocation8 + $0x1c0] sm:$0xff]  ;;  %v231_v44 = vld [vmem:[#allocation8 + $0xb8] sm:$0xff] }
  0x28   :  { %281 = vmatpush.msra.mxu0 %v218_v26  ;;  %339 = vmatpush.msrb.mxu3 %v268_v27  ;;  %v246_v45 = vld [vmem:[#allocation8 + $0x130] sm:$0xff]  ;;  %v213_v46 = vld [vmem:[#allocation8 + $0x28] sm:$0xff]  ;;  %v263_v47 = vld [vmem:[#allocation8 + $0x1b8] sm:$0xff]  ;;  %v357_v26 = vlaneseq }
  0x29   :  { %300 = vmatpush.msra.mxu1 %v235_v28  ;;  %321 = vmatpush.msrb.mxu2 %v250_v29  ;;  %v212_v48 = vld [vmem:[#allocation8 + $0x20] sm:$0xff]  ;;  %v211_v49 = vld [vmem:[#allocation8 + $0x18] sm:$0xff]  ;;  %v230_v50 = vld [vmem:[#allocation8 + $0xb0] sm:$0xff] }
  0x2a   :  { %282 = vmatpush.msra.mxu0 %v217_v30  ;;  %340 = vmatpush.msrb.mxu3 %v267_v31  ;;  %v245_v51 = vld [vmem:[#allocation8 + $0x128] sm:$0xff]  ;;  %v262_v52 = vld [vmem:[#allocation8 + $0x1b0] sm:$0xff]  ;;  %v244_v55 = vld [vmem:[#allocation8 + $0x120] sm:$0xff]  ;;  %v754_v29 = vand.u32 127, %v357_v26 }
  0x2b   :  { %301 = vmatpush.msra.mxu1 %v234_v32  ;;  %322 = vmatpush.msrb.mxu2 %v249_v33  ;;  %v210_v53 = vld [vmem:[#allocation8 + $0x10] sm:$0xff]  ;;  %v229_v54 = vld [vmem:[#allocation8 + $0xa8] sm:$0xff]  ;;  %v228_v58 = vld [vmem:[#allocation8 + $0xa0] sm:$0xff] }
  0x2c   :  { %283 = vmatpush.msra.mxu0 %v216_v34  ;;  %341 = vmatpush.msrb.mxu3 %v266_v35  ;;  %v261_v56 = vld [vmem:[#allocation8 + $0x1a8] sm:$0xff]  ;;  %v243_v59 = vld [vmem:[#allocation8 + $0x118] sm:$0xff]  ;;  %v260_v60 = vld [vmem:[#allocation8 + $0x1a0] sm:$0xff]  ;;  %vm359_vm1 = vcmp.lt.s32.totalorder %v754_v29, 24  ;;  %vm374_vm2 = vcmp.ge.s32.totalorder %v754_v29, 16  ;;  %vm361_vm4 = vcmp.lt.s32.totalorder %v754_v29, 8 }
  0x2d   :  { %302 = vmatpush.msra.mxu1 %v233_v36  ;;  %323 = vmatpush.msrb.mxu2 %v248_v37  ;;  %v209_v57 = vld [vmem:[#allocation8 + $0x8] sm:$0xff]  ;;  %v208_v61 = vld [vmem:[#allocation8] sm:$0xff]  ;;  %v227_v62 = vld [vmem:[#allocation8 + $0x98] sm:$0xff]  ;;  %vm367_vm5 = vcmp.ge.s32.totalorder %v754_v29, 8  ;;  %vm368_vm6 = vcmp.lt.s32.totalorder %v754_v29, 16 }
  0x2e   :  { %284 = vmatpush.msra.mxu0 %v215_v38  ;;  %342 = vmatpush.msrb.mxu3 %v265_v39  ;;  %v242_v63 = vld [vmem:[#allocation8 + $0x110] sm:$0xff]  ;;  %v259_v0 = vld [vmem:[#allocation8 + $0x198] sm:$0xff]  ;;  %v241_v2 = vld [vmem:[#allocation8 + $0x108] sm:$0xff] }
  0x2f   :  { %303 = vmatpush.msra.mxu1 %v232_v40  ;;  %324 = vmatpush.msrb.mxu2 %v247_v41  ;;  %v226_v1 = vld [vmem:[#allocation8 + $0x90] sm:$0xff]  ;;  %v225_v4 = vld [vmem:[#allocation8 + $0x88] sm:$0xff]  ;;  %v240_v5 = vld [vmem:[#allocation8 + $0x100] sm:$0xff] }
  0x30   :  { %285 = vmatpush.msra.mxu0 %v214_v42  ;;  %343 = vmatpush.msrb.mxu3 %v264_v43  ;;  %v258_v3 = vld [vmem:[#allocation8 + $0x190] sm:$0xff]  ;;  %v257_v6 = vld [vmem:[#allocation8 + $0x188] sm:$0xff]  ;;  %v224_v7 = vld [vmem:[#allocation8 + $0x80] sm:$0xff] }
  0x31   :  { %304 = vmatpush.msra.mxu1 %v231_v44  ;;  %325 = vmatpush.msrb.mxu2 %v246_v45  ;;  %v256_v8 = vld [vmem:[#allocation8 + $0x180] sm:$0xff]  ;;  %v110_v9 = vld [vmem:[#allocation7] sm:$0xf]  ;;  %v498_v27 = vld [vmem:[%s807_s4] ss:$0 sm:$0xff]  ;;  %s690_s4 = smov [#allocation11]  }
  0x32   :  { %286 = vmatpush.msra.mxu0 %v213_v46  ;;  %344 = vmatpush.msrb.mxu3 %v263_v47  ;;  %v112_v10 = vperm.slane %v110_v9, 0  ;;  %v114_v14 = vperm.slane %v110_v9, 2  ;;  %v113_v15 = vperm.slane %v110_v9, 1  ;;  %v115_v16 = vperm.slane %v110_v9, 3  ;;  %vm760_vm3 = vmand %vm374_vm2, %vm359_vm1  ;;  %v426_v43 = vld [vmem:[#allocation10 + $0x78] sm:$0xff]  ;;  %v425_v44 = vld [vmem:[#allocation10 + $0x70] sm:$0xff] }
  0x33   :  { %305 = vmatpush.msra.mxu1 %v230_v50  ;;  %326 = vmatpush.msrb.mxu2 %v245_v51  ;;  %vm771_vm7 = vmand %vm367_vm5, %vm368_vm6  ;;  %s453_s27 = sshll.u32 %s690_s4, 4  ;;  %s454_s27 = int_to_ptr.vmem [resolvable:$true] %s453_s27 }
  0x34   :  { %287 = vmatpush.msra.mxu0 %v212_v48  ;;  %345 = vmatpush.msrb.mxu3 %v262_v52 }
  0x35   :  { %306 = vmatpush.msra.mxu1 %v229_v54  ;;  %327 = vmatpush.msrb.mxu2 %v244_v55 }
  0x36   :  { %288 = vmatpush.msra.mxu0 %v211_v49  ;;  %346 = vmatpush.msrb.mxu3 %v261_v56 }
  0x37   :  { %307 = vmatpush.msra.mxu1 %v228_v58  ;;  %328 = vmatpush.msrb.mxu2 %v243_v59  ;;  %v423_v58 = vld [vmem:[#allocation10 + $0x60] sm:$0xff]  ;;  %v422_v59 = vld [vmem:[#allocation10 + $0x58] sm:$0xff] }
  0x38   :  { %289 = vmatpush.msra.mxu0 %v210_v53  ;;  %347 = vmatpush.msrb.mxu3 %v260_v60  ;;  %v421_v60 = vld [vmem:[#allocation10 + $0x50] sm:$0xff] }
  0x39   :  { %308 = vmatpush.msra.mxu1 %v227_v62  ;;  %329 = vmatpush.msrb.mxu2 %v242_v63  ;;  %v419_v62 = vld [vmem:[#allocation10 + $0x40] sm:$0xff]  ;;  %v418_v63 = vld [vmem:[#allocation10 + $0x38] sm:$0xff] }
  0x3a   :  { %290 = vmatpush.msra.mxu0 %v209_v57  ;;  %348 = vmatpush.msrb.mxu3 %v259_v0  ;;  %v424_v57 = vld [vmem:[#allocation10 + $0x68] sm:$0xff]  ;;  %v417_v0 = vld [vmem:[#allocation10 + $0x30] sm:$0xff] }
  0x3b   :  { %309 = vmatpush.msra.mxu1 %v226_v1  ;;  %330 = vmatpush.msrb.mxu2 %v241_v2  ;;  %v416_v1 = vld [vmem:[#allocation10 + $0x28] sm:$0xff]  ;;  %v415_v2 = vld [vmem:[#allocation10 + $0x20] sm:$0xff] }
  0x3c   :  { %291 = vmatpush.msra.mxu0 %v208_v61  ;;  %349 = vmatpush.msrb.mxu3 %v258_v3  ;;  %v420_v61 = vld [vmem:[#allocation10 + $0x48] sm:$0xff]  ;;  %v414_v3 = vld [vmem:[#allocation10 + $0x18] sm:$0xff] }
  0x3d   :  { %310 = vmatpush.msra.mxu1 %v225_v4  ;;  %331 = vmatpush.msrb.mxu2 %v240_v5  ;;  %v413_v4 = vld [vmem:[#allocation10 + $0x10] sm:$0xff]  ;;  %v412_v5 = vld [vmem:[#allocation10 + $0x8] sm:$0xff] }
  0x3e   :  { %350 = vmatpush.msrb.mxu3 %v257_v6  ;;  %427 = vmatpush.msrb.mxu0 %v426_v43  ;;  %v411_v6 = vld [vmem:[#allocation10] sm:$0xff] }
  0x3f   :  { %311 = vmatpush.msra.mxu1 %v224_v7 }
  0x40   :  { %351 = vmatpush.msrb.mxu3 %v256_v8  ;;  %428 = vmatpush.msrb.mxu0 %v425_v44 }
  0x42   :  { %429 = vmatpush.msrb.mxu0 %v424_v57 }
  0x44   :  { %430 = vmatpush.msrb.mxu0 %v423_v58 }
  0x46   :  { %431 = vmatpush.msrb.mxu0 %v422_v59 }
  0x48   :  { %432 = vmatpush.msrb.mxu0 %v421_v60 }
  0x4a   :  { %433 = vmatpush.msrb.mxu0 %v420_v61 }
  0x4c   :  { %434 = vmatpush.msrb.mxu0 %v419_v62 }
  0x4e   :  { %435 = vmatpush.msrb.mxu0 %v418_v63 }
  0x50   :  { %436 = vmatpush.msrb.mxu0 %v417_v0 }
  0x52   :  { %437 = vmatpush.msrb.mxu0 %v416_v1 }
  0x54   :  { %438 = vmatpush.msrb.mxu0 %v415_v2 }
  0x56   :  { %439 = vmatpush.msrb.mxu0 %v414_v3 }
  0x58   :  { %440 = vmatpush.msrb.mxu0 %v413_v4 }
  0x5a   :  { %441 = vmatpush.msrb.mxu0 %v412_v5 }
  0x5c   :  { %442 = vmatpush.msrb.mxu0 %v411_v6 }
  0x99   :  { %v141_v11 = vpop.f32.mrf.mxu1 }
  0x9a   :  { %v142_v12 = vadd.f32 %v141_v11, %v112_v10 }
  0x9c   :  { %v204_v13 = vmax.f32 %v142_v12, 0.0 }
  0x9e   :  { %292 = vmatmul.f32.vlgmr.msra.gmra.mxu0 %v204_v13 }
  0x9f   :  { %v181_v17 = vpop.f32.mrf.mxu2 }
  0xa0   :  { %v182_v18 = vadd.f32 %v181_v17, %v114_v14 }
  0xa1   :  { %v161_v19 = vpop.f32.mrf.mxu1  ;;  %v201_v20 = vpop.f32.mrf.mxu3 }
  0xa2   :  { %v206_v21 = vmax.f32 %v182_v18, 0.0  ;;  %v162_v22 = vadd.f32 %v161_v19, %v113_v15  ;;  %v202_v23 = vadd.f32 %v201_v20, %v115_v16 }
  0xa4   :  { %v205_v24 = vmax.f32 %v162_v22, 0.0  ;;  %v207_v25 = vmax.f32 %v202_v23, 0.0  ;;  %332 = vmatmul.f32.vlgmr.msrb.gmra.mxu2 %v206_v21 }
  0xa6   :  { %312 = vmatmul.f32.vlgmr.msra.gmra.mxu1 %v205_v24  ;;  %352 = vmatmul.f32.vlgmr.msrb.gmra.mxu3 %v207_v25 }
 0x11b   :  { %v293_v28 = vpop.f32.mrf.mxu0 }
 0x11c   :  { %v294_v31 = vadd.f32 %v498_v27, %v293_v28 }
 0x123   :  { %v313_v30 = vpop.f32.mrf.mxu1 }
 0x124   :  { %v314_v32 = vadd.f32 %v313_v30, %v294_v31 }
 0x127   :  { %v333_v33 = vpop.f32.mrf.mxu2 }
 0x128   :  { %v334_v34 = vadd.f32 %v333_v33, %v314_v32 }
 0x129   :  { %v353_v35 = vpop.f32.mrf.mxu3 }
 0x12a   :  { %v354_v37 = vadd.f32 %v353_v35, %v334_v34 }
 0x12c   :  { %356 = vst [vmem:[#allocation11] sm:$0xff] %v354_v37  ;;  %v376_v38 = vsel %vm760_vm3, %v354_v37, -1e+30  ;;  %v363_v39 = vsel %vm361_vm4, %v354_v37, -1e+30 }
 0x12d   :  { %377 = vmax.xlane.f32.xlu1 %v376_v38  ;;  %364 = vmax.xlane.f32.xlu0 %v363_v39  ;;  %v370_v41 = vsel %vm771_vm7, %v354_v37, -1e+30  ;;  %458 = dma.vmem_to_hbm [thread:$0]  %s454_s27, 128, %s456_s30, [#allocation4]  }
 0x135   :  { %371 = vmax.xlane.f32.xlu0 %v370_v41 }
 0x1a0   :  { %v365_v42 = vpop.xlane.xlu0 %364  ;;  %v378_v47 = vpop.xlane.xlu1 %377 }
 0x1a1   :  { %v366_v45 = vsel %vm361_vm4, %v365_v42, 0.0 }
 0x1a8   :  { %v372_v46 = vpop.xlane.xlu0 %371 }
 0x1a9   :  { %v373_v48 = vsel %vm771_vm7, %v372_v46, %v366_v45 }
 0x1aa   :  { %v379_v49 = vsel %vm760_vm3, %v378_v47, %v373_v48 }
 0x1ab   :  { %v380_v50 = vsub.f32 %v354_v37, %v379_v49 }
 0x1ad   :  { %v381_v51 = vmul.f32 1.442695, %v380_v50 }
 0x1af   :  { %499 = vpow2.f32 %v381_v51 }
 0x1b5   :  { %v500_v52 = vpop.eup %499 }
 0x1b6   :  { %v383_v53 = vsel %vm359_vm1, %v500_v52, 0.0 }
 0x1b7   :  { %v388_v54 = vsel %vm771_vm7, %v383_v53, 0.0  ;;  %v384_v55 = vsel %vm361_vm4, %v383_v53, 0.0  ;;  %v392_v56 = vsel %vm760_vm3, %v383_v53, 0.0 }
 0x1b8   :  { %389 = vadd.xlane.f32.xlu2 %v388_v54  ;;  %385 = vadd.xlane.f32.xlu1 %v384_v55 }
 0x1c0   :  { %393 = vadd.xlane.f32.xlu2 %v392_v56 }
 0x22b   :  { %v390_v7 = vpop.xlane.xlu2 %389  ;;  %v386_v8 = vpop.xlane.xlu1 %385 }
 0x22c   :  { %v387_v9 = vsel %vm361_vm4, %v386_v8, 1.0 }
 0x22d   :  { %v391_v10 = vsel %vm771_vm7, %v390_v7, %v387_v9 }
 0x233   :  { %v394_v11 = vpop.xlane.xlu2 %393 }
 0x234   :  { %v395_v12 = vsel %vm760_vm3, %v394_v11, %v391_v10 }
 0x235   :  { %501 = vrcp.f32 %v395_v12  ;;  %v407_v16 = vand.u32 2147483648, %v395_v12  ;;  %v405_v18 = vand.u32 2147483647, %v395_v12  ;;  %vm401_vm9 = vweird.f32 %v395_v12 }
 0x237   :  { %v408_v20 = vor.u32 1.1754944e-38, %v407_v16  ;;  %vm406_vm11 = vcmp.eq.f32.partialorder %v405_v18, 8.507059e+37 }
 0x23b   :  { %v502_v13 = vpop.eup %501 }
 0x23c   :  { %v397_v14 = vmul.f32 %v502_v13, %v395_v12  ;;  %vm402_vm8 = vweird.f32 %v502_v13 }
 0x23d   :  { %vm403_vm10 = vmor %vm401_vm9, %vm402_vm8 }
 0x23e   :  { %v398_v15 = vsub.f32 1.0, %v397_v14 }
 0x240   :  { %v399_v17 = vmul.f32 %v502_v13, %v398_v15 }
 0x242   :  { %v400_v19 = vadd.f32 %v502_v13, %v399_v17 }
 0x244   :  { %v404_v21 = vsel %vm403_vm10, %v502_v13, %v400_v19 }
 0x245   :  { %v409_v22 = vsel %vm406_vm11, %v408_v20, %v404_v21 }
 0x246   :  { %v410_v23 = vmul.f32 %v409_v22, %v383_v53 }
 0x248   :  { %443 = vmatmul.f32.vlgmr.msrb.gmra.mxu0 %v410_v23 }
 0x2c5   :  { %v444_v24 = vpop.f32.mrf.mxu0 }
 0x2c6   :  { %447 = vst [vmem:[#allocation12] sm:$0xff] %v444_v24 }
 0x2c7   :  { %469 = dma.vmem_to_hbm [thread:$0]  %s465_s9, 128, %s467_s12, [#allocation13]  }
 0x2c8   :  { %677 = dma.done.wait [#allocation4], 128  }
 0x2c9   :  { %678 = vsyncadd [#allocation4], 4294967168 }
 0x2ca   :  { %679 = dma.done.wait [#allocation13], 128  }
 0x2cb   :  { %680 = vsyncadd [#allocation13], 4294967168 }
 0x2cc   :  { %478 = vsyncpa [#allocation3], 1 }
 0x2cd   :  { %479 = vsyncpa [#allocation6], 1 }
 0x2ce   :  { %480 = vsyncpa [#allocation9], 1 }
 0x2cf   :  { %481 = vsyncpa [#allocation4], 1 }
 0x2d0   :  { %482 = vsyncpa [#allocation13], 1 }

</bundles_post_ra>
